<compile_context>
chip_gen: v7x
topology: tpu7x:2x2x1
jax: 0.10.0
libtpu: 0.0.40
codegen_flags: <defaults>
</compile_context>

<pallas_src>
import jax
import jax.numpy as jnp
from jax.experimental import pallas as pl
from jax.experimental.pallas import tpu as pltpu


def _linear_map_kernel(s_ref, a_ref, ws_ref, wa_ref, out_ref):
    # Two small MXU dots with f32 accumulation, one fused (lane-dense) store.
    acc = jnp.dot(s_ref[...], ws_ref[...], preferred_element_type=jnp.float32)
    acc = acc + jnp.dot(a_ref[...], wa_ref[...], preferred_element_type=jnp.float32)
    out_ref[...] = acc.astype(out_ref.dtype)


def _round_up(x, m):
    return ((x + m - 1) // m) * m


def linear_map_forward(state, action, w_state, w_action, *,
                       block_b=1024, compute_dtype=None,
                       out_dtype=jnp.float32, vmem_limit_bytes=None):
    """Pallas LinearMapLearner.forward (bias=False).

    state:    (B, state_dim)
    action:   (B, action_dim)
    w_state:  (state_dim, hidden)   == state_embed.weight.T
    w_action: (action_dim, hidden)  == action_embed.weight.T
    returns   (B, hidden) in out_dtype
    """
    B, S = state.shape
    A = action.shape[1]
    H = w_state.shape[1]
    assert w_state.shape == (S, H) and w_action.shape == (A, H)

    if compute_dtype is not None:      # e.g. jnp.bfloat16 on v6e / v7x
        state = state.astype(compute_dtype)
        action = action.astype(compute_dtype)
        w_state = w_state.astype(compute_dtype)     # no-op if already stored bf16
        w_action = w_action.astype(compute_dtype)

    in_bytes = state.dtype.itemsize
    cost = pl.CostEstimate(
        flops=2 * B * (S + A) * H,
        transcendentals=0,
        bytes_accessed=(B * (S + A) + (S + A) * H) * in_bytes
        + B * H * jnp.dtype(out_dtype).itemsize,
    )

    if B <= block_b:
        # Small batch: everything resident in VMEM, single grid point.
        return pl.pallas_call(
            _linear_map_kernel,
            out_shape=jax.ShapeDtypeStruct((B, H), out_dtype),
            in_specs=[pl.BlockSpec(memory_space=pltpu.VMEM)] * 4,
            out_specs=pl.BlockSpec(memory_space=pltpu.VMEM),
            cost_estimate=cost,
        )(state, action, w_state, w_action)

    # Large batch: tile over rows.  Force an even grid length so v7x's two
    # TensorCores (sharded over the "parallel" axis) stay balanced; keep tile
    # rows 16-aligned so both f32 (8-row) and bf16 (16-row) layouts are legal.
    nblocks = pl.cdiv(B, block_b)
    if nblocks > 1 and nblocks % 2 == 1:
        nblocks += 1
    block_rows = _round_up(pl.cdiv(B, nblocks), 16)
    nblocks = pl.cdiv(B, block_rows)

    cparams = {"dimension_semantics": ("parallel",)}
    if vmem_limit_bytes is not None:   # only needed if block_b is pushed >~4K rows
        cparams["vmem_limit_bytes"] = vmem_limit_bytes

    return pl.pallas_call(
        _linear_map_kernel,
        out_shape=jax.ShapeDtypeStruct((B, H), out_dtype),
        grid=(nblocks,),
        in_specs=[
            pl.BlockSpec((block_rows, S), lambda i: (i, 0)),
            pl.BlockSpec((block_rows, A), lambda i: (i, 0)),
            # Constant block index: Pallas skips re-DMA of the (tiny, ~100 KiB)
            # weights across grid steps; they stay resident in VMEM.
            pl.BlockSpec((S, H), lambda i: (0, 0)),
            pl.BlockSpec((A, H), lambda i: (0, 0)),
        ],
        out_specs=pl.BlockSpec((block_rows, H), lambda i: (i, 0)),
        compiler_params=pltpu.CompilerParams(**cparams),
        cost_estimate=cost,
    )(state, action, w_state, w_action)


def init_params(key, state_dim, action_dim, hidden_dim):
    """Synthetic parameters; weights stored pre-transposed as (in, hidden).

    A bf16 copy is stored once so the bf16 compute path never re-casts the
    weights per call.
    """
    k_s, k_a = jax.random.split(key, 2)

    def lin(k, fan_in, fan_out):
        scale = 1.0 / jnp.sqrt(jnp.float32(fan_in))
        return jax.random.uniform(k, (fan_in, fan_out), jnp.float32, -scale, scale)

    w_state = lin(k_s, state_dim, hidden_dim)    # = Ws^T
    w_action = lin(k_a, action_dim, hidden_dim)  # = Wa^T
    return {
        "w_state": w_state,
        "w_action": w_action,
        "w_state_bf16": w_state.astype(jnp.bfloat16),
        "w_action_bf16": w_action.astype(jnp.bfloat16),
    }


def reference_forward(state, action, p):
    """Pure-JAX reference (unfused, matches the PyTorch module)."""
    return state @ p["w_state"] + action @ p["w_action"]


if __name__ == "__main__":
    # Shapes consistent with the module: hidden_dim defaults to 512.
    state_dim, action_dim, hidden_dim = 32, 16, 512

    key = jax.random.PRNGKey(0)
    k_params, k_s1, k_a1, k_s2, k_a2, k_s3, k_a3 = jax.random.split(key, 7)
    params = init_params(k_params, state_dim, action_dim, hidden_dim)

    # --- small-batch path (single resident VMEM block, no grid) --------------
    B = 8
    state = jax.random.normal(k_s1, (B, state_dim), jnp.float32)
    action = jax.random.normal(k_a1, (B, action_dim), jnp.float32)
    out = jax.block_until_ready(
        linear_map_forward(state, action, params["w_state"], params["w_action"]))
    ref = reference_forward(state, action, params)
    assert out.shape == (B, hidden_dim)
    assert jnp.allclose(out, ref, atol=1e-5, rtol=1e-5), \
        "Pallas output mismatch vs reference (small batch)"

    # --- large-batch path (even grid of 1024-row tiles) -----------------------
    B2 = 2048
    state2 = jax.random.normal(k_s2, (B2, state_dim), jnp.float32)
    action2 = jax.random.normal(k_a2, (B2, action_dim), jnp.float32)
    out2 = jax.block_until_ready(
        linear_map_forward(state2, action2, params["w_state"], params["w_action"]))
    ref2 = reference_forward(state2, action2, params)
    assert out2.shape == (B2, hidden_dim)
    assert jnp.allclose(out2, ref2, atol=1e-4, rtol=1e-5), \
        "Pallas output mismatch vs reference (tiled batch)"

    # --- odd block count -> forced even grid, partial last block --------------
    B3 = 2600
    state3 = jax.random.normal(k_s3, (B3, state_dim), jnp.float32)
    action3 = jax.random.normal(k_a3, (B3, action_dim), jnp.float32)
    out3 = jax.block_until_ready(
        linear_map_forward(state3, action3, params["w_state"], params["w_action"]))
    ref3 = reference_forward(state3, action3, params)
    assert out3.shape == (B3, hidden_dim)
    assert jnp.allclose(out3, ref3, atol=1e-4, rtol=1e-5), \
        "Pallas output mismatch vs reference (uneven tiled batch)"

    # --- bf16 compute path (v6e/v7x fast path; f32 accumulation & output) -----
    out_bf = jax.block_until_ready(
        linear_map_forward(state2, action2,
                           params["w_state_bf16"], params["w_action_bf16"],
                           compute_dtype=jnp.bfloat16))
    assert out_bf.shape == (B2, hidden_dim)
    assert jnp.allclose(out_bf, ref2, atol=3e-2, rtol=3e-2), \
        "Pallas output mismatch vs reference (bf16 compute)"

    print("KERNEL_OK")
</pallas_src>

<mosaic_0001>
module attributes {stable_mosaic.version = 11 : i64} {
  func.func @_linear_map_kernel(%arg0: memref<8x32xf32, #tpu.memory_space<vmem>>, %arg1: memref<8x16xf32, #tpu.memory_space<vmem>>, %arg2: memref<32x512xf32, #tpu.memory_space<vmem>>, %arg3: memref<16x512xf32, #tpu.memory_space<vmem>>, %arg4: memref<8x512xf32, #tpu.memory_space<vmem>>) attributes {dimension_semantics = [], scalar_prefetch = 0 : i64, scratch_operands = 0 : i64, tpu.core_type = #tpu.core_type<tc>} {
    %c0 = arith.constant 0 : index
    %c0_0 = arith.constant 0 : index
    %0 = vector.load %arg0[%c0, %c0_0] : memref<8x32xf32, #tpu.memory_space<vmem>>, vector<8x32xf32>
    %c0_1 = arith.constant 0 : index
    %c0_2 = arith.constant 0 : index
    %1 = vector.load %arg2[%c0_1, %c0_2] : memref<32x512xf32, #tpu.memory_space<vmem>>, vector<32x512xf32>
    %cst = arith.constant dense<0.000000e+00> : vector<8x512xf32>
    %2 = tpu.matmul %0, %1, %cst {dimension_numbers = #tpu.dot_dimension_numbers<[1], [0], [0], [1], [0, 0, 1, 1], [], []>} : vector<8x32xf32>, vector<32x512xf32>, vector<8x512xf32> -> vector<8x512xf32>
    %c0_3 = arith.constant 0 : index
    %c0_4 = arith.constant 0 : index
    %3 = vector.load %arg1[%c0_3, %c0_4] : memref<8x16xf32, #tpu.memory_space<vmem>>, vector<8x16xf32>
    %c0_5 = arith.constant 0 : index
    %c0_6 = arith.constant 0 : index
    %4 = vector.load %arg3[%c0_5, %c0_6] : memref<16x512xf32, #tpu.memory_space<vmem>>, vector<16x512xf32>
    %cst_7 = arith.constant dense<0.000000e+00> : vector<8x512xf32>
    %5 = tpu.matmul %3, %4, %cst_7 {dimension_numbers = #tpu.dot_dimension_numbers<[1], [0], [0], [1], [0, 0, 1, 1], [], []>} : vector<8x16xf32>, vector<16x512xf32>, vector<8x512xf32> -> vector<8x512xf32>
    %6 = arith.addf %2, %5 : vector<8x512xf32>
    %c0_8 = arith.constant 0 : index
    %c0_9 = arith.constant 0 : index
    %7 = vector.load %arg4[%c0_8, %c0_9] : memref<8x512xf32, #tpu.memory_space<vmem>>, vector<8x512xf32>
    tpu.vector_store %arg4[%c0_8, %c0_9], %6 {strides = array<i32>} : memref<8x512xf32, #tpu.memory_space<vmem>>, vector<8x512xf32>,
    return
  }
}

</mosaic_0001>

<bundles_post_ra>
// kernel: tpu_custom_call.1
= control target key start
LH: loop header
LB: loop body
LE: loop exit
PB: predicated region body
PF: predicated region fallthrough
CT: control target
= control target key end

     0   :  { %9 = vsyncpa [#allocation3], 0  ;;  %s661_s0 = inlined_call_operand.hbm [shape: f32[8,32], index: 0, kind: input, shape index: {}]   ;;  %s662_s1 = inlined_call_operand.hbm [shape: f32[8,16], index: 1, kind: input, shape index: {}]   ;;  %s663_s2 = inlined_call_operand.hbm [shape: f32[32,512], index: 2, kind: input, shape index: {}]   ;;  %s664_s3 = inlined_call_operand.hbm [shape: f32[16,512], index: 3, kind: input, shape index: {}]   ;;  %s665_s4 = inlined_call_operand.hbm [shape: f32[8,512], index: 4, kind: output, shape index: {}]  }
   0x1   :  { %10 = vsyncpa [#allocation6], 0 }
   0x2   :  { %11 = vsyncpa [#allocation9], 0 }
   0x3   :  { %12 = vsyncpa [#allocation4], 0  ;;  %s566_s15 = smov [#allocation5]   ;;  %s567_s17 = smov [#allocation2]  }
   0x4   :  { %s29_s16 = sshll.u32 %s566_s15, 4  ;;  %s19_s18 = sshll.u32 %s567_s17, 4  ;;  %s30_s16 = int_to_ptr.vmem [resolvable:$true] %s29_s16  ;;  %s20_s18 = int_to_ptr.vmem [resolvable:$true] %s19_s18 }
   0x5   :  { %s448_s21 = scalar_lea.hbm %s662_s1, 128 }
   0x6   :  { %p449_p0 = scmp.ne.s32.totalorder %s662_s1, %s448_s21  ;;  %p452_p1 = scmp.lt.u32.totalorder %s448_s21, %s662_s1 }
   0x8   :  { %p454_p2 = pnand %p452_p1, %p449_p0 }
   0xa   :  { %457 = shalt.err (!%p454_p2)
}
   0xb   :  { %s458_s26 = scalar_lea.vmem %s30_s16, 128  ;;  %p463_p4 = scmp.lt.s32.totalorder %s30_s16, %s30_s16 }
   0xc   :  { %p459_p3 = scmp.ne.s32.totalorder %s30_s16, %s458_s26  ;;  %p464_p5 = scmp.lt.s32.totalorder %s458_s26, %s458_s26 }
   0xe   :  { %p465_p6 = por %p464_p5, %p463_p4 }
  0x10   :  { %p466_p7 = pnand %p465_p6, %p459_p3 }
  0x12   :  { %469 = shalt.err (!%p466_p7)
}
  0x13   :  { %32 = dma.hbm_to_vmem [thread:$0]  %s662_s1, 128, %s30_s16, [#allocation6]  }
  0x14   :  { %s470_s5 = scalar_lea.hbm %s661_s0, 128 }
  0x15   :  { %p471_p8 = scmp.ne.s32.totalorder %s661_s0, %s470_s5  ;;  %p474_p9 = scmp.lt.u32.totalorder %s470_s5, %s661_s0 }
  0x17   :  { %p476_p10 = pnand %p474_p9, %p471_p8 }
  0x19   :  { %479 = shalt.err (!%p476_p10)
}
  0x1a   :  { %s480_s10 = scalar_lea.vmem %s20_s18, 128  ;;  %p485_p12 = scmp.lt.s32.totalorder %s20_s18, %s20_s18 }
  0x1b   :  { %p481_p11 = scmp.ne.s32.totalorder %s20_s18, %s480_s10  ;;  %p486_p13 = scmp.lt.s32.totalorder %s480_s10, %s480_s10 }
  0x1d   :  { %p487_p0 = por %p486_p13, %p485_p12 }
  0x1f   :  { %p488_p1 = pnand %p487_p0, %p481_p11 }
  0x21   :  { %491 = shalt.err (!%p488_p1)
}
  0x22   :  { %22 = dma.hbm_to_vmem [thread:$0]  %s661_s0, 128, %s20_s18, [#allocation3]  }
  0x23   :  { %s568_s12 = smov [#allocation7]   ;;  %s492_s16 = scalar_lea.hbm %s663_s2, 2048 }
  0x24   :  { %s38_s13 = sshll.u32 %s568_s12, 4  ;;  %p493_p2 = scmp.ne.s32.totalorder %s663_s2, %s492_s16  ;;  %s39_s13 = int_to_ptr.vmem [resolvable:$true] %s38_s13 }
  0x25   :  { %p496_p3 = scmp.lt.u32.totalorder %s492_s16, %s663_s2 }
  0x27   :  { %p498_p4 = pnand %p496_p3, %p493_p2 }
  0x29   :  { %501 = shalt.err (!%p498_p4)
}
  0x2a   :  { %s502_s22 = scalar_lea.vmem %s39_s13, 2048  ;;  %p507_p6 = scmp.lt.s32.totalorder %s39_s13, %s39_s13 }
  0x2b   :  { %p503_p5 = scmp.ne.s32.totalorder %s39_s13, %s502_s22  ;;  %p508_p7 = scmp.lt.s32.totalorder %s502_s22, %s502_s22 }
  0x2d   :  { %p509_p8 = por %p508_p7, %p507_p6 }
  0x2f   :  { %p510_p9 = pnand %p509_p8, %p503_p5 }
  0x31   :  { %513 = shalt.err (!%p510_p9)
}
  0x32   :  { %s569_s0 = smov 512   ;;  %s570_s18 = smov 32  }
  0x33   :  { %44 = dma.hbm_to_vmem [thread:$0]  %s663_s2, 2048, %s39_s13, [#allocation6], %s569_s0, %s569_s0, %s570_s18  }
  0x34   :  { %s571_s25 = smov [#allocation8]   ;;  %s514_s29 = scalar_lea.hbm %s664_s3, 1024 }
  0x35   :  { %s50_s26 = sshll.u32 %s571_s25, 4  ;;  %p515_p10 = scmp.ne.s32.totalorder %s664_s3, %s514_s29  ;;  %s51_s26 = int_to_ptr.vmem [resolvable:$true] %s50_s26 }
  0x36   :  { %p518_p11 = scmp.lt.u32.totalorder %s514_s29, %s664_s3 }
  0x38   :  { %p520_p12 = pnand %p518_p11, %p515_p10 }
  0x3a   :  { %523 = shalt.err (!%p520_p12)
}
  0x3b   :  { %s524_s8 = scalar_lea.vmem %s51_s26, 1024  ;;  %p529_p0 = scmp.lt.s32.totalorder %s51_s26, %s51_s26 }
  0x3c   :  { %p525_p13 = scmp.ne.s32.totalorder %s51_s26, %s524_s8  ;;  %p530_p1 = scmp.lt.s32.totalorder %s524_s8, %s524_s8 }
  0x3e   :  { %p531_p2 = por %p530_p1, %p529_p0 }
  0x40   :  { %p532_p3 = pnand %p531_p2, %p525_p13 }
  0x42   :  { %535 = shalt.err (!%p532_p3)
}
  0x43   :  { %56 = dma.hbm_to_vmem [thread:$0]  %s664_s3, 1024, %s51_s26, [#allocation9], %s569_s0, %s569_s0, %s570_s18  }
  0x44   :  { %558 = dma.done.wait [#allocation3], 128  }
  0x45   :  { %559 = vsyncadd [#allocation3], 4294967168 }
  0x46   :  { %560 = dma.done.wait [#allocation6], 2176  }
  0x47   :  { %561 = vsyncadd [#allocation6], 4294965120 }
  0x48   :  { %562 = dma.done.wait [#allocation9], 1024  }
  0x49   :  { %563 = vsyncadd [#allocation9], 4294966272  ;;  %v572_v0 = vmov 0.0   ;;  %v88_v1 = vld [vmem:[#allocation8 + $0x8] sm:$0xff]  ;;  %v90_v3 = vld [vmem:[#allocation8 + $0x18] sm:$0xff]  ;;  %vm95_vm0 = vcmask 130048  }
  0x4a   :  { %163 = vmatprep.mubr.f32.mxu0 %v572_v0  ;;  %234 = vmatprep.mubr.f32.mxu1 %v572_v0  ;;  %v92_v2 = vld [vmem:[#allocation8 + $0x28] sm:$0xff]  ;;  %v94_v5 = vld [vmem:[#allocation8 + $0x38] sm:$0xff]  ;;  %v87_v6 = vld [vmem:[#allocation8] sm:$0xff]  ;;  %vm241_vm1 = vcmask 261120   ;;  %s573_s3 = smov [#allocation10]  }
  0x4b   :  { %v412_v4 = vpack.c.bf16 %v92_v2, %v88_v1  ;;  %v91_v7 = vld [vmem:[#allocation8 + $0x20] sm:$0xff]  ;;  %v416_v8 = vpack.c.bf16 %v94_v5, %v90_v3  ;;  %v89_v10 = vld [vmem:[#allocation8 + $0x10] sm:$0xff]  ;;  %v86_v12 = vld [vmem:[#allocation5] sm:$0xff]  ;;  %s397_s10 = sshll.u32 %s573_s3, 4  ;;  %s398_s10 = int_to_ptr.vmem [resolvable:$true] %s397_s10 }
  0x4c   :  { %v414_v9 = vpack.c.bf16 %v91_v7, %v87_v6  ;;  %v93_v11 = vld [vmem:[#allocation8 + $0x30] sm:$0xff]  ;;  %v71_v14 = vld [vmem:[#allocation7 + $0x8] sm:$0xff]  ;;  %v73_v16 = vld [vmem:[#allocation7 + $0x18] sm:$0xff]  ;;  %s536_s1 = scalar_lea.vmem %s398_s10, 512  ;;  %p541_p5 = scmp.lt.s32.totalorder %s398_s10, %s398_s10 }
  0x4d   :  { %413 = vmatprep.subr.bf16.mxu0 %v412_v4  ;;  %v418_v13 = vpack.c.bf16 %v93_v11, %v89_v10  ;;  %v75_v15 = vld [vmem:[#allocation7 + $0x28] sm:$0xff]  ;;  %417 = vmatprep.subr.bf16.mxu1 %v416_v8  ;;  %v77_v18 = vld [vmem:[#allocation7 + $0x38] sm:$0xff]  ;;  %v70_v19 = vld [vmem:[#allocation7] sm:$0xff]  ;;  %p537_p4 = scmp.ne.s32.totalorder %s398_s10, %s536_s1  ;;  %p542_p6 = scmp.lt.s32.totalorder %s536_s1, %s536_s1 }
  0x4e   :  { %415 = vmatpush1.bf16.msra.mxu0 %v414_v9  ;;  %v420_v17 = vpack.c.bf16 %v75_v15, %v71_v14  ;;  %v74_v20 = vld [vmem:[#allocation7 + $0x20] sm:$0xff]  ;;  %v428_v21 = vpack.c.bf16 %v77_v18, %v73_v16  ;;  %v72_v23 = vld [vmem:[#allocation7 + $0x10] sm:$0xff]  ;;  %v79_v25 = vld [vmem:[#allocation7 + $0x48] sm:$0xff] }
  0x4f   :  { %419 = vmatpush1.bf16.msra.mxu1 %v418_v13  ;;  %v422_v22 = vpack.c.bf16 %v74_v20, %v70_v19  ;;  %v76_v24 = vld [vmem:[#allocation7 + $0x30] sm:$0xff]  ;;  %v83_v27 = vld [vmem:[#allocation7 + $0x68] sm:$0xff]  ;;  %v81_v28 = vld [vmem:[#allocation7 + $0x58] sm:$0xff]  ;;  %p543_p7 = por %p542_p6, %p541_p5 }
  0x50   :  { %421 = vmatprep.subr.bf16.mxu0 %v420_v17  ;;  %v430_v26 = vpack.c.bf16 %v76_v24, %v72_v23  ;;  %v85_v29 = vld [vmem:[#allocation7 + $0x78] sm:$0xff]  ;;  %429 = vmatprep.subr.bf16.mxu1 %v428_v21  ;;  %v424_v30 = vpack.c.bf16 %v83_v27, %v79_v25  ;;  %v78_v32 = vld [vmem:[#allocation7 + $0x40] sm:$0xff]  ;;  %v80_v34 = vld [vmem:[#allocation7 + $0x50] sm:$0xff] }
  0x51   :  { %408 = vmatmul.mubr.msk.f32.vlgmr.msra.gmra.mrb[0].mxu0 %vm95_vm0, %v86_v12  ;;  %v432_v31 = vpack.c.bf16 %v85_v29, %v81_v28  ;;  %v82_v33 = vld [vmem:[#allocation7 + $0x60] sm:$0xff]  ;;  %v84_v36 = vld [vmem:[#allocation7 + $0x70] sm:$0xff]  ;;  %p544_p8 = pnand %p543_p7, %p537_p4 }
  0x52   :  { %409 = vmatmul.mubr.msk.f32.vlgmr.msra.gmra.mrb[0].mxu1 %vm95_vm0, %v86_v12  ;;  %423 = vmatpush1.bf16.msra.mxu0 %v422_v22  ;;  %v426_v35 = vpack.c.bf16 %v82_v33, %v78_v32  ;;  %v434_v37 = vpack.c.bf16 %v84_v36, %v80_v34  ;;  %v69_v38 = vld [vmem:[#allocation2] sm:$0xff] }
  0x53   :  { %431 = vmatpush1.bf16.msra.mxu1 %v430_v26  ;;  %425 = vmatprep.subr.bf16.mxu0 %v424_v30 }
  0x54   :  { %433 = vmatprep.subr.bf16.mxu1 %v432_v31  ;;  %309 = vmatprep.mubr.f32.mxu0 %v572_v0 }
  0x55   :  { %380 = vmatprep.mubr.f32.mxu1 %v572_v0 }
  0x56   :  { %427 = vmatpush1.bf16.msra.mxu0 %v426_v35 }
  0x57   :  { %435 = vmatpush1.bf16.msra.mxu1 %v434_v37 }
  0x59   :  { %410 = vmatmul.mubr.msk.f32.vlgmr.msra.gmra.mrb[0].mxu0 %vm241_vm1, %v69_v38 }
  0x5a   :  { %411 = vmatmul.mubr.msk.f32.vlgmr.msra.gmra.mrb[0].mxu1 %vm241_vm1, %v69_v38 }
 0x12c   :  { %v311_v39 = vpop.f32.mrb[0].mxu0 }
 0x12d   :  { %387 = vst [vmem:[#allocation10] sm:$0xff] %v311_v39  ;;  %v382_v40 = vpop.f32.mrb[0].mxu1  ;;  %v313_v41 = vpop.f32.mrb[1].mxu0 }
 0x12e   :  { %389 = vst [vmem:[#allocation10 + $0x10] sm:$0xff] %v382_v40  ;;  %388 = vst [vmem:[#allocation10 + $0x8] sm:$0xff] %v313_v41  ;;  %v384_v42 = vpop.f32.mrb[1].mxu1 }
 0x12f   :  { %390 = vst [vmem:[#allocation10 + $0x18] sm:$0xff] %v384_v42 }
 0x130   :  { %547 = shalt.err (!%p544_p8)
}
 0x131   :  { %s548_s13 = scalar_lea.hbm %s665_s4, 512 }
 0x132   :  { %p549_p9 = scmp.ne.s32.totalorder %s665_s4, %s548_s13  ;;  %p552_p10 = scmp.lt.u32.totalorder %s548_s13, %s665_s4 }
 0x134   :  { %p554_p11 = pnand %p552_p10, %p549_p9 }
 0x136   :  { %557 = shalt.err (!%p554_p11)
}
 0x137   :  { %400 = dma.vmem_to_hbm [thread:$0]  %s398_s10, 512, %s665_s4, [#allocation4]  }
 0x138   :  { %564 = dma.done.wait [#allocation4], 512  }
 0x139   :  { %565 = vsyncadd [#allocation4], 4294966784 }
 0x13a   :  { %404 = vsyncpa [#allocation3], 1 }
 0x13b   :  { %405 = vsyncpa [#allocation6], 1 }
 0x13c   :  { %406 = vsyncpa [#allocation9], 1 }
 0x13d   :  { %407 = vsyncpa [#allocation4], 1 }

</bundles_post_ra>
